<compile_context>
chip_gen: v7x
topology: tpu7x:2x2x1
jax: 0.10.0
libtpu: 0.0.40
codegen_flags: <defaults>
</compile_context>

<pallas_src>
import math

import jax
import jax.numpy as jnp
from jax.experimental import pallas as pl
from jax.experimental.pallas import tpu as pltpu

LANES = 128               # lane width of a vreg / last-dim tiling unit
SUBLANES = 8              # sublane tiling unit for the second-to-last dim
_FANIN_MAX_PROMPTS = 8    # above this, switch to the stacked-reduction path


def _round_up(x, m):
    return ((x + m - 1) // m) * m


def _vmem_budget():
    """Generation-aware (working-set budget bytes, explicit vmem_limit_bytes)."""
    try:
        vmem = int(pltpu.get_tpu_info().vmem_capacity_bytes)
    except Exception:
        vmem = None
    if not vmem:
        # Unknown chip: stay under v5e's 16 MiB default scoped VMEM limit.
        return 12 * 1024 * 1024, None
    # ~21 MiB on v7x (64 MiB VMEM), 24 MiB on v5e/v6e (128 MiB VMEM).
    budget = min(24 * 1024 * 1024, vmem // 3)
    limit = max(budget, min(vmem * 3 // 4, budget + 8 * 1024 * 1024))
    return budget, int(limit)


def _make_fanin_kernel(num_prompts):
    """o = sum_i w[0, i] * x_i  (cast tiles to f32, accumulate in f32)."""

    def kernel(w_ref, *refs):
        x_refs = refs[:num_prompts]
        o_ref = refs[num_prompts]
        acc = w_ref[0, 0] * x_refs[0][...].astype(jnp.float32)
        for i in range(1, num_prompts):
            acc = acc + w_ref[0, i] * x_refs[i][...].astype(jnp.float32)
        o_ref[...] = acc.astype(o_ref.dtype)

    return kernel


def _reduce_kernel(w_ref, x_ref, o_ref, acc_ref):
    """Reduction over prompts (grid axis 1) with an f32 VMEM accumulator."""
    l = pl.program_id(1)

    @pl.when(l == 0)
    def _():
        acc_ref[...] = jnp.zeros_like(acc_ref)

    acc_ref[...] += w_ref[0, l] * x_ref[0].astype(jnp.float32)

    @pl.when(l == pl.num_programs(1) - 1)
    def _():
        o_ref[...] = acc_ref[...].astype(o_ref.dtype)


def weighted_sum_pallas(w2d, slabs):
    """w2d: (1, L) f32.  slabs: list of L (M, 128) arrays (same dtype).

    Returns the (M, 128) weighted sum in the slab dtype.
    """
    num_prompts = len(slabs)
    m_rows, n = slabs[0].shape
    assert n == LANES
    slab_dtype = slabs[0].dtype
    elem_bytes = jnp.dtype(slab_dtype).itemsize
    budget, vmem_limit = _vmem_budget()

    cp_kwargs = {}
    if vmem_limit is not None:
        cp_kwargs["vmem_limit_bytes"] = vmem_limit

    if num_prompts <= _FANIN_MAX_PROMPTS:
        # L separate lane-dense inputs, VPU fan-in accumulate in registers.
        per_row = 2 * (num_prompts + 1) * LANES * elem_bytes   # double-buffered tiles
        tile_rows = max(SUBLANES, (budget // per_row) // SUBLANES * SUBLANES)
        tile_rows = min(tile_rows, _round_up(m_rows, SUBLANES))
        grid = (pl.cdiv(m_rows, tile_rows),)
        data_spec = pl.BlockSpec((tile_rows, LANES), lambda i: (i, 0))
        return pl.pallas_call(
            _make_fanin_kernel(num_prompts),
            out_shape=jax.ShapeDtypeStruct((m_rows, LANES), slab_dtype),
            grid=grid,
            in_specs=[pl.BlockSpec(memory_space=pltpu.MemorySpace.SMEM)]  # weights
            + [data_spec] * num_prompts,                                   # L slabs
            out_specs=data_spec,
            compiler_params=pltpu.CompilerParams(
                dimension_semantics=("parallel",), **cp_kwargs),
        )(w2d, *slabs)

    # Large L: stacked (L, M, 128) input + reduction axis over prompts, so the
    # double-buffered footprint stays one prompt tile and tiles remain large.
    stacked = jnp.stack(slabs, axis=0)
    per_row = (2 * LANES * elem_bytes      # double-buffered input tile
               + 2 * LANES * elem_bytes    # output tile
               + LANES * 4)                # f32 accumulator
    tile_rows = max(SUBLANES, (budget // per_row) // SUBLANES * SUBLANES)
    tile_rows = min(tile_rows, _round_up(m_rows, SUBLANES))
    grid = (pl.cdiv(m_rows, tile_rows), num_prompts)
    return pl.pallas_call(
        _reduce_kernel,
        out_shape=jax.ShapeDtypeStruct((m_rows, LANES), slab_dtype),
        grid=grid,
        in_specs=[pl.BlockSpec(memory_space=pltpu.MemorySpace.SMEM),
                  pl.BlockSpec((1, tile_rows, LANES), lambda i, l: (l, i, 0))],
        out_specs=pl.BlockSpec((tile_rows, LANES), lambda i, l: (i, 0)),
        scratch_shapes=[pltpu.VMEM((tile_rows, LANES), jnp.float32)],
        compiler_params=pltpu.CompilerParams(
            dimension_semantics=("parallel", "arbitrary"), **cp_kwargs),
    )(w2d, stacked)


def _layout_meta(paras):
    """Static per-key layout: (key, shape, dtype, flat size, starting row)."""
    keys = list(paras[0].keys())
    slab_dtype = jnp.result_type(*[paras[0][k].dtype for k in keys])
    if not jnp.issubdtype(slab_dtype, jnp.floating):
        slab_dtype = jnp.float32
    meta, row = [], 0
    for k in keys:
        v = paras[0][k]
        size = math.prod(v.shape) if v.shape else 1
        meta.append((k, v.shape, v.dtype, size, row))
        row += _round_up(size, LANES) // LANES
    m_rows = _round_up(row, SUBLANES)
    return meta, m_rows, slab_dtype


def _pack_paras(paras, meta, m_rows, slab_dtype):
    """One lane-dense (m_rows, 128) slab per prompt dict, in the narrow dtype.

    In a real training loop `paras` are parameters whose layout rarely changes,
    so the packed slabs should be cached across forward calls.
    """
    slabs = []
    for d in paras:
        parts = []
        for (k, _shp, _dt, size, _r0) in meta:
            v = jnp.asarray(d[k]).astype(slab_dtype).reshape(-1)
            pad = _round_up(size, LANES) - size
            if pad:
                v = jnp.pad(v, (0, pad))
            parts.append(v)
        flat = parts[0] if len(parts) == 1 else jnp.concatenate(parts)
        tail = m_rows * LANES - flat.shape[0]
        if tail:
            flat = jnp.pad(flat, (0, tail))
        slabs.append(flat.reshape(m_rows, LANES))
    return slabs


def composed_net_forward(weight, paras):
    """JAX/Pallas equivalent of composedNet.forward.

    weight: (1, L) weighted_prompt parameter.
    paras:  list of L dicts, key -> array (same keys/shapes across dicts).
    Returns dict key -> sum_i weight[0, i] * paras[i][key] in the param dtype.
    """
    num_prompts = int(weight.shape[-1])
    assert num_prompts == len(paras), "number of paras must equal to length"
    if not paras[0]:
        return {}

    meta, m_rows, slab_dtype = _layout_meta(paras)
    slabs = _pack_paras(paras, meta, m_rows, slab_dtype)
    w2d = jnp.asarray(weight, jnp.float32).reshape(1, num_prompts)

    out_flat = weighted_sum_pallas(w2d, slabs).reshape(-1)

    target = {}
    for (k, shp, dt, size, r0) in meta:
        seg = out_flat[r0 * LANES: r0 * LANES + size]
        # Torch's in-place `ans += w*x` keeps the original param dtype.
        target[k] = seg.reshape(shp).astype(dt)
    return target


if __name__ == "__main__":
    key = jax.random.PRNGKey(0)

    param_shapes = {
        "fc.weight": (16, 32),
        "fc.bias": (32,),
        "emb.weight": (64, 128),
        "scale": (),
    }

    def make_paras(key, length, dtype):
        paras = []
        for _ in range(length):
            d = {}
            for name, shp in param_shapes.items():
                key, sk = jax.random.split(key)
                d[name] = jax.random.normal(sk, shp, dtype=jnp.float32).astype(dtype)
            paras.append(d)
        return key, paras

    def reference(weight, paras):
        ref = {}
        for name in paras[0]:
            acc = jnp.zeros(paras[0][name].shape, jnp.float32)
            for i in range(len(paras)):
                acc = acc + weight[0, i] * paras[i][name].astype(jnp.float32)
            ref[name] = acc
        return ref

    fwd = jax.jit(composed_net_forward)
    ok = True

    # Case 1: small L (fan-in path), f32 params.
    length = 4
    key, wk = jax.random.split(key)
    w = jax.random.uniform(wk, (1, length), dtype=jnp.float32)
    key, paras = make_paras(key, length, jnp.float32)
    out = jax.block_until_ready(fwd(w, paras))
    ref = reference(w, paras)
    for name in param_shapes:
        ok = ok and bool(jnp.allclose(out[name].astype(jnp.float32), ref[name],
                                      atol=1e-5, rtol=1e-5))

    # Case 2: small L, bf16 params stay 16-bit through HBM, f32 accumulate.
    key, wk = jax.random.split(key)
    w = jax.random.uniform(wk, (1, length), dtype=jnp.float32)
    key, paras_bf16 = make_paras(key, length, jnp.bfloat16)
    out = jax.block_until_ready(fwd(w, paras_bf16))
    ref = reference(w, paras_bf16)
    for name in param_shapes:
        ok = ok and out[name].dtype == jnp.bfloat16
        ok = ok and bool(jnp.allclose(out[name].astype(jnp.float32), ref[name],
                                      atol=2e-2, rtol=2e-2))

    # Case 3: large L exercises the stacked-reduction (accumulator) path.
    length = 12
    key, wk = jax.random.split(key)
    w = jax.random.uniform(wk, (1, length), dtype=jnp.float32)
    key, paras_big = make_paras(key, length, jnp.float32)
    out = jax.block_until_ready(fwd(w, paras_big))
    ref = reference(w, paras_big)
    for name in param_shapes:
        ok = ok and bool(jnp.allclose(out[name].astype(jnp.float32), ref[name],
                                      atol=1e-5, rtol=1e-5))

    print("KERNEL_OK" if ok else "KERNEL_MISMATCH")
</pallas_src>

<mosaic_0001>
module attributes {stable_mosaic.version = 11 : i64} {
  func.func @kernel(%arg0: i32, %arg1: memref<1x4xf32, #tpu.memory_space<smem>>, %arg2: memref<72x128xf32, #tpu.memory_space<vmem>>, %arg3: memref<72x128xf32, #tpu.memory_space<vmem>>, %arg4: memref<72x128xf32, #tpu.memory_space<vmem>>, %arg5: memref<72x128xf32, #tpu.memory_space<vmem>>, %arg6: memref<72x128xf32, #tpu.memory_space<vmem>>) attributes {dimension_semantics = [#tpu.dimension_semantics<parallel>], iteration_bounds = array<i64: 1>, scalar_prefetch = 0 : i64, scratch_operands = 0 : i64, tpu.core_type = #tpu.core_type<tc>, window_params = [{transform_indices = @transform_0, window_bounds = array<i64: 1, 4>}, {transform_indices = @transform_1, window_bounds = array<i64: 72, 128>}, {transform_indices = @transform_2, window_bounds = array<i64: 72, 128>}, {transform_indices = @transform_3, window_bounds = array<i64: 72, 128>}, {transform_indices = @transform_4, window_bounds = array<i64: 72, 128>}, {transform_indices = @transform_5, window_bounds = array<i64: 72, 128>}]} {
    %c0 = arith.constant 0 : index
    %c0_0 = arith.constant 0 : index
    %0 = memref.load %arg1[%c0, %c0_0] : memref<1x4xf32, #tpu.memory_space<smem>>
    %c0_1 = arith.constant 0 : index
    %c0_2 = arith.constant 0 : index
    %1 = vector.load %arg2[%c0_1, %c0_2] : memref<72x128xf32, #tpu.memory_space<vmem>>, vector<72x128xf32>
    %2 = vector.broadcast %0 : f32 to vector<72x128xf32>
    %3 = arith.mulf %2, %1 : vector<72x128xf32>
    %c0_3 = arith.constant 0 : index
    %c1 = arith.constant 1 : index
    %4 = memref.load %arg1[%c0_3, %c1] : memref<1x4xf32, #tpu.memory_space<smem>>
    %c0_4 = arith.constant 0 : index
    %c0_5 = arith.constant 0 : index
    %5 = vector.load %arg3[%c0_4, %c0_5] : memref<72x128xf32, #tpu.memory_space<vmem>>, vector<72x128xf32>
    %6 = vector.broadcast %4 : f32 to vector<72x128xf32>
    %7 = arith.mulf %6, %5 : vector<72x128xf32>
    %8 = arith.addf %3, %7 : vector<72x128xf32>
    %c0_6 = arith.constant 0 : index
    %c2 = arith.constant 2 : index
    %9 = memref.load %arg1[%c0_6, %c2] : memref<1x4xf32, #tpu.memory_space<smem>>
    %c0_7 = arith.constant 0 : index
    %c0_8 = arith.constant 0 : index
    %10 = vector.load %arg4[%c0_7, %c0_8] : memref<72x128xf32, #tpu.memory_space<vmem>>, vector<72x128xf32>
    %11 = vector.broadcast %9 : f32 to vector<72x128xf32>
    %12 = arith.mulf %11, %10 : vector<72x128xf32>
    %13 = arith.addf %8, %12 : vector<72x128xf32>
    %c0_9 = arith.constant 0 : index
    %c3 = arith.constant 3 : index
    %14 = memref.load %arg1[%c0_9, %c3] : memref<1x4xf32, #tpu.memory_space<smem>>
    %c0_10 = arith.constant 0 : index
    %c0_11 = arith.constant 0 : index
    %15 = vector.load %arg5[%c0_10, %c0_11] : memref<72x128xf32, #tpu.memory_space<vmem>>, vector<72x128xf32>
    %16 = vector.broadcast %14 : f32 to vector<72x128xf32>
    %17 = arith.mulf %16, %15 : vector<72x128xf32>
    %18 = arith.addf %13, %17 : vector<72x128xf32>
    %c0_12 = arith.constant 0 : index
    %c0_13 = arith.constant 0 : index
    %19 = vector.load %arg6[%c0_12, %c0_13] : memref<72x128xf32, #tpu.memory_space<vmem>>, vector<72x128xf32>
    tpu.vector_store %arg6[%c0_12, %c0_13], %18 {strides = array<i32>} : memref<72x128xf32, #tpu.memory_space<vmem>>, vector<72x128xf32>,
    return
  }
  func.func @transform_0(%arg0: i32) -> (i32, i32) {
    %c0_i32 = arith.constant 0 : i32
    %c0_i32_0 = arith.constant 0 : i32
    %c0_i32_1 = arith.constant 0 : i32
    return %c0_i32, %c0_i32_0 : i32, i32
  }
  func.func @transform_1(%arg0: i32) -> (i32, i32) {
    %c0_i32 = arith.constant 0 : i32
    %c0_i32_0 = arith.constant 0 : i32
    return %arg0, %c0_i32 : i32, i32
  }
  func.func @transform_2(%arg0: i32) -> (i32, i32) {
    %c0_i32 = arith.constant 0 : i32
    %c0_i32_0 = arith.constant 0 : i32
    return %arg0, %c0_i32 : i32, i32
  }
  func.func @transform_3(%arg0: i32) -> (i32, i32) {
    %c0_i32 = arith.constant 0 : i32
    %c0_i32_0 = arith.constant 0 : i32
    return %arg0, %c0_i32 : i32, i32
  }
  func.func @transform_4(%arg0: i32) -> (i32, i32) {
    %c0_i32 = arith.constant 0 : i32
    %c0_i32_0 = arith.constant 0 : i32
    return %arg0, %c0_i32 : i32, i32
  }
  func.func @transform_5(%arg0: i32) -> (i32, i32) {
    %c0_i32 = arith.constant 0 : i32
    %c0_i32_0 = arith.constant 0 : i32
    return %arg0, %c0_i32 : i32, i32
  }
}

</mosaic_0001>

<bundles_post_ra>
// kernel: composed_net_forward.1
= control target key start
LH: loop header
LB: loop body
LE: loop exit
PB: predicated region body
PF: predicated region fallthrough
CT: control target
= control target key end

     0   :  { %10 = vsyncpa [#allocation3], 0  ;;  %s385_s0 = inlined_call_operand.vmem [shape: f32[1,4], index: 0, kind: input, shape index: {}]   ;;  %s386_s1 = inlined_call_operand.vmem [shape: f32[72,128], index: 1, kind: input, shape index: {}]   ;;  %s387_s2 = inlined_call_operand.vmem [shape: f32[72,128], index: 2, kind: input, shape index: {}]   ;;  %s388_s3 = inlined_call_operand.vmem [shape: f32[72,128], index: 3, kind: input, shape index: {}]   ;;  %s389_s4 = inlined_call_operand.vmem [shape: f32[72,128], index: 4, kind: input, shape index: {}]   ;;  %s390_s5 = inlined_call_operand.vmem [shape: f32[72,128], index: 5, kind: output, shape index: {}]  }
   0x1   :  { %s17_s20 = sshll.u32 %s385_s0, 4  ;;  %s18_s20 = int_to_ptr.vmem [resolvable:$true] %s17_s20 }
   0x2   :  { %s158_s21 = scalar_lea.vmem %s18_s20, 16  ;;  %p163_p1 = scmp.lt.s32.totalorder %s18_s20, %s18_s20 }
   0x3   :  { %p159_p0 = scmp.ne.s32.totalorder %s18_s20, %s158_s21  ;;  %p164_p2 = scmp.lt.s32.totalorder %s158_s21, %s158_s21 }
   0x5   :  { %p165_p3 = por %p164_p2, %p163_p1 }
   0x7   :  { %p166_p4 = pnand %p165_p3, %p159_p0 }
   0x9   :  { %169 = shalt.err (!%p166_p4)
}
   0xa   :  { %s172_s22 = smov [#allocation2]  }
   0xb   :  { %20 = dma.vmem_to_smem %s18_s20, 16, %s172_s22, [#allocation3]  }
   0xc   :  { %170 = dma.done.wait [#allocation3], 16  }
   0xd   :  { %171 = vsyncadd [#allocation3], 4294967280 }
   0xe   :  { %32 = sfence }
   0xf   :  { %s33_s23 = sld [smem:[#allocation2]]  ;;  %s154_s24 = sld [smem:[#allocation2 + $0x1]]  ;;  %v34_v0 = vld [vmem:[%s386_s1] sm:$0xff]  ;;  %v35_v4 = vld [vmem:[%s386_s1 + $0x8] sm:$0xff]  ;;  %v36_v10 = vld [vmem:[%s386_s1 + $0x10] sm:$0xff] }
  0x10   :  { %s155_s25 = sld [smem:[#allocation2 + $0x2]]  ;;  %s156_s26 = sld [smem:[#allocation2 + $0x3]]  ;;  %v54_v1 = vld [vmem:[%s387_s2] sm:$0xff]  ;;  %v55_v5 = vld [vmem:[%s387_s2 + $0x8] sm:$0xff]  ;;  %v56_v11 = vld [vmem:[%s387_s2 + $0x10] sm:$0xff] }
  0x11   :  { %v83_v2 = vld [vmem:[%s388_s3] sm:$0xff]  ;;  %v84_v6 = vld [vmem:[%s388_s3 + $0x8] sm:$0xff]  ;;  %v85_v16 = vld [vmem:[%s388_s3 + $0x10] sm:$0xff] }
  0x12   :  { %v112_v3 = vld [vmem:[%s389_s4] sm:$0xff]  ;;  %v113_v7 = vld [vmem:[%s389_s4 + $0x8] sm:$0xff]  ;;  %v114_v17 = vld [vmem:[%s389_s4 + $0x10] sm:$0xff] }
  0x13   :  { %v37_v22 = vld [vmem:[%s386_s1 + $0x18] sm:$0xff]  ;;  %v38_v30 = vld [vmem:[%s386_s1 + $0x20] sm:$0xff]  ;;  %v39_v42 = vld [vmem:[%s386_s1 + $0x28] sm:$0xff] }
  0x14   :  { %v57_v23 = vld [vmem:[%s387_s2 + $0x18] sm:$0xff]  ;;  %v58_v35 = vld [vmem:[%s387_s2 + $0x20] sm:$0xff]  ;;  %v59_v47 = vld [vmem:[%s387_s2 + $0x28] sm:$0xff] }
  0x15   :  { %v230_v8 = vstv %s33_s23  ;;  %v232_v9 = vstv %s154_s24  ;;  %v86_v24 = vld [vmem:[%s388_s3 + $0x18] sm:$0xff]  ;;  %v87_v36 = vld [vmem:[%s388_s3 + $0x20] sm:$0xff] }
  0x16   :  { %v44_v12 = vmul.f32 %v230_v8, %v34_v0  ;;  %v64_v13 = vmul.f32 %v232_v9, %v54_v1  ;;  %v242_v14 = vstv %s155_s25  ;;  %v244_v15 = vstv %s156_s26  ;;  %v115_v29 = vld [vmem:[%s389_s4 + $0x18] sm:$0xff]  ;;  %v116_v41 = vld [vmem:[%s389_s4 + $0x20] sm:$0xff] }
  0x17   :  { %v93_v18 = vmul.f32 %v242_v14, %v83_v2  ;;  %v122_v19 = vmul.f32 %v244_v15, %v112_v3  ;;  %v45_v20 = vmul.f32 %v230_v8, %v35_v4  ;;  %v65_v21 = vmul.f32 %v232_v9, %v55_v5  ;;  %v88_v48 = vld [vmem:[%s388_s3 + $0x28] sm:$0xff]  ;;  %v40_v54 = vld [vmem:[%s386_s1 + $0x30] sm:$0xff]  ;;  %v41_v2 = vld [vmem:[%s386_s1 + $0x38] sm:$0xff] }
  0x18   :  { %v73_v25 = vadd.f32 %v64_v13, %v44_v12  ;;  %v94_v26 = vmul.f32 %v242_v14, %v84_v6  ;;  %v123_v27 = vmul.f32 %v244_v15, %v113_v7  ;;  %v46_v28 = vmul.f32 %v230_v8, %v36_v10  ;;  %v117_v53 = vld [vmem:[%s389_s4 + $0x28] sm:$0xff]  ;;  %v60_v55 = vld [vmem:[%s387_s2 + $0x30] sm:$0xff]  ;;  %v61_v3 = vld [vmem:[%s387_s2 + $0x38] sm:$0xff] }
  0x19   :  { %v74_v31 = vadd.f32 %v65_v21, %v45_v20  ;;  %v66_v32 = vmul.f32 %v232_v9, %v56_v11  ;;  %v95_v33 = vmul.f32 %v242_v14, %v85_v16  ;;  %v124_v34 = vmul.f32 %v244_v15, %v114_v17  ;;  %v89_v60 = vld [vmem:[%s388_s3 + $0x30] sm:$0xff]  ;;  %v90_v10 = vld [vmem:[%s388_s3 + $0x38] sm:$0xff] }
  0x1a   :  { %v102_v37 = vadd.f32 %v93_v18, %v73_v25  ;;  %v47_v38 = vmul.f32 %v230_v8, %v37_v22  ;;  %v67_v39 = vmul.f32 %v232_v9, %v57_v23  ;;  %v96_v40 = vmul.f32 %v242_v14, %v86_v24  ;;  %v118_v1 = vld [vmem:[%s389_s4 + $0x30] sm:$0xff]  ;;  %v119_v11 = vld [vmem:[%s389_s4 + $0x38] sm:$0xff]  ;;  %v42_v18 = vld [vmem:[%s386_s1 + $0x40] sm:$0xff] }
  0x1b   :  { %v103_v43 = vadd.f32 %v94_v26, %v74_v31  ;;  %v75_v44 = vadd.f32 %v66_v32, %v46_v28  ;;  %v125_v45 = vmul.f32 %v244_v15, %v115_v29  ;;  %v48_v46 = vmul.f32 %v230_v8, %v38_v30  ;;  %v91_v24 = vld [vmem:[%s388_s3 + $0x40] sm:$0xff] }
  0x1c   :  { %v131_v49 = vadd.f32 %v122_v19, %v102_v37  ;;  %v76_v50 = vadd.f32 %v67_v39, %v47_v38  ;;  %v68_v51 = vmul.f32 %v232_v9, %v58_v35  ;;  %v97_v52 = vmul.f32 %v242_v14, %v87_v36  ;;  %v62_v19 = vld [vmem:[%s387_s2 + $0x40] sm:$0xff] }
  0x1d   :  { %v132_v56 = vadd.f32 %v123_v27, %v103_v43  ;;  %v104_v57 = vadd.f32 %v95_v33, %v75_v44  ;;  %v126_v58 = vmul.f32 %v244_v15, %v116_v41  ;;  %v49_v59 = vmul.f32 %v230_v8, %v39_v42  ;;  %v120_v29 = vld [vmem:[%s389_s4 + $0x40] sm:$0xff] }
  0x1e   :  { %140 = vst [vmem:[%s390_s5] sm:$0xff] %v131_v49  ;;  %v105_v61 = vadd.f32 %v96_v40, %v76_v50  ;;  %v77_v62 = vadd.f32 %v68_v51, %v48_v46  ;;  %v69_v63 = vmul.f32 %v232_v9, %v59_v47  ;;  %v98_v0 = vmul.f32 %v242_v14, %v88_v48 }
  0x1f   :  { %141 = vst [vmem:[%s390_s5 + $0x8] sm:$0xff] %v132_v56  ;;  %v133_v4 = vadd.f32 %v124_v34, %v104_v57  ;;  %v127_v5 = vmul.f32 %v244_v15, %v117_v53  ;;  %v50_v6 = vmul.f32 %v230_v8, %v40_v54  ;;  %v70_v7 = vmul.f32 %v232_v9, %v60_v55 }
  0x20   :  { %v134_v12 = vadd.f32 %v125_v45, %v105_v61  ;;  %v106_v13 = vadd.f32 %v97_v52, %v77_v62  ;;  %v78_v16 = vadd.f32 %v69_v63, %v49_v59  ;;  %v99_v17 = vmul.f32 %v242_v14, %v89_v60 }
  0x21   :  { %142 = vst [vmem:[%s390_s5 + $0x10] sm:$0xff] %v133_v4  ;;  %v79_v20 = vadd.f32 %v70_v7, %v50_v6  ;;  %v128_v21 = vmul.f32 %v244_v15, %v118_v1  ;;  %v51_v22 = vmul.f32 %v230_v8, %v41_v2  ;;  %v71_v23 = vmul.f32 %v232_v9, %v61_v3 }
  0x22   :  { %143 = vst [vmem:[%s390_s5 + $0x18] sm:$0xff] %v134_v12  ;;  %v135_v25 = vadd.f32 %v126_v58, %v106_v13  ;;  %v107_v26 = vadd.f32 %v98_v0, %v78_v16  ;;  %v100_v27 = vmul.f32 %v242_v14, %v90_v10  ;;  %v129_v28 = vmul.f32 %v244_v15, %v119_v11 }
  0x23   :  { %v108_v30 = vadd.f32 %v99_v17, %v79_v20  ;;  %v80_v31 = vadd.f32 %v71_v23, %v51_v22  ;;  %v52_v32 = vmul.f32 %v230_v8, %v42_v18  ;;  %v72_v33 = vmul.f32 %v232_v9, %v62_v19 }
  0x24   :  { %144 = vst [vmem:[%s390_s5 + $0x20] sm:$0xff] %v135_v25  ;;  %v136_v34 = vadd.f32 %v127_v5, %v107_v26  ;;  %v101_v35 = vmul.f32 %v242_v14, %v91_v24  ;;  %v130_v39 = vmul.f32 %v244_v15, %v120_v29 }
  0x25   :  { %v137_v36 = vadd.f32 %v128_v21, %v108_v30  ;;  %v109_v37 = vadd.f32 %v100_v27, %v80_v31  ;;  %v81_v38 = vadd.f32 %v72_v33, %v52_v32 }
  0x26   :  { %145 = vst [vmem:[%s390_s5 + $0x28] sm:$0xff] %v136_v34 }
  0x27   :  { %146 = vst [vmem:[%s390_s5 + $0x30] sm:$0xff] %v137_v36  ;;  %v138_v8 = vadd.f32 %v129_v28, %v109_v37  ;;  %v110_v9 = vadd.f32 %v101_v35, %v81_v38 }
  0x29   :  { %147 = vst [vmem:[%s390_s5 + $0x38] sm:$0xff] %v138_v8  ;;  %v139_v14 = vadd.f32 %v130_v39, %v110_v9 }
  0x2b   :  { %148 = vst [vmem:[%s390_s5 + $0x40] sm:$0xff] %v139_v14 }
  0x2c   :  { %153 = vsyncpa [#allocation3], 1 }

</bundles_post_ra>
